<compile_context>
chip_gen: v7x
topology: tpu7x:2x2x1
jax: 0.10.0
libtpu: 0.0.40
codegen_flags: <defaults>
</compile_context>

<pallas_src>
import functools

import jax
import jax.numpy as jnp
from jax.experimental import pallas as pl
from jax.experimental.pallas import tpu as pltpu


# ---------------------------------------------------------------------------
# Kernels
# ---------------------------------------------------------------------------

def _se_fused_kernel(x_ref, w1_ref, w2_ref, o_ref, *, inv_hw, tb):
    """Fused squeeze + excite + scale for `tb` whole images per grid step.

    x_ref / o_ref: (TB, C, HW)  — native NCHW with spatial flattened on lanes.
    w1_ref: (Cr, C)  = excitation[0].weight (resident in VMEM).
    w2_ref: (C, Cr)  = excitation[2].weight (resident in VMEM).
    """
    w1 = w1_ref[...]
    w2 = w2_ref[...]
    for i in range(tb):  # static unroll; every image is independent
        # Squeeze: mean over the spatial (lane) axis, f32 accumulation,
        # keepdims so channels stay on sublanes (no relayout anywhere).
        y = jnp.sum(x_ref[i], axis=-1, keepdims=True,
                    dtype=jnp.float32) * inv_hw                       # (C, 1)
        # Excitation in column form: h = relu(W1 @ y), g = sigmoid(W2 @ h).
        # Weights in native dtype; f32 accumulate via preferred_element_type.
        h = jnp.maximum(
            jnp.dot(w1, y.astype(w1.dtype),
                    preferred_element_type=jnp.float32), 0.0)         # (Cr, 1)
        g = jax.nn.sigmoid(
            jnp.dot(w2, h.astype(w2.dtype),
                    preferred_element_type=jnp.float32))              # (C, 1) f32
        # Scale: gate broadcast over spatial lanes; x is re-read from VMEM
        # (vld slack, flat vreg pressure); multiply in f32, cast the product.
        o_ref[i] = (x_ref[i] * g).astype(o_ref.dtype)


def _se_squeeze_gate_kernel(x_ref, w1_ref, w2_ref, s_ref, acc_ref, *, inv_hw):
    """HW-tiled fallback, pass 1: accumulate the spatial mean over HW tiles
    and emit the per-channel sigmoid gate on the last tile of each image.

    x_ref: (1, C, THW);  s_ref: (1, C, 1) f32;  acc_ref: (C, 1) f32 scratch.
    """
    t = pl.program_id(1)

    @pl.when(t == 0)
    def _():
        acc_ref[...] = jnp.zeros_like(acc_ref)

    acc_ref[...] += jnp.sum(x_ref[0], axis=-1, keepdims=True,
                            dtype=jnp.float32)                        # (C, 1)

    @pl.when(t == pl.num_programs(1) - 1)
    def _():
        y = acc_ref[...] * inv_hw                                     # (C, 1)
        h = jnp.maximum(
            jnp.dot(w1_ref[...], y.astype(w1_ref.dtype),
                    preferred_element_type=jnp.float32), 0.0)         # (Cr, 1)
        g = jax.nn.sigmoid(
            jnp.dot(w2_ref[...], h.astype(w2_ref.dtype),
                    preferred_element_type=jnp.float32))              # (C, 1)
        s_ref[0] = g


def _se_scale_kernel(x_ref, s_ref, o_ref):
    """HW-tiled fallback, pass 2: apply the per-channel gate to one tile."""
    o_ref[0] = (x_ref[0] * s_ref[0]).astype(o_ref.dtype)


# ---------------------------------------------------------------------------
# Tiling / VMEM heuristics
# ---------------------------------------------------------------------------

_FALLBACK_VMEM_CAPACITY = 64 * 1024 * 1024  # v7x physical (smallest of v5e/v6e/v7x)


def _vmem_capacity_bytes():
    try:
        cap = getattr(pltpu.get_tpu_info(), "vmem_capacity_bytes", None)
        if cap:
            return int(cap)
    except Exception:
        pass
    return _FALLBACK_VMEM_CAPACITY


def _pick_batch_tile(B, per_image_bytes, budget_bytes, target_steps=8):
    """Largest TB that (a) divides B, (b) keeps one block <= budget_bytes and
    (c) leaves >= min(B, target_steps) grid steps (>= 4 per TC on a 2-TC v7x
    megacore), preferring even step counts.  Returns None when even a single
    image exceeds the budget (caller falls back to HW tiling)."""
    if per_image_bytes > budget_bytes:
        return None
    need_steps = min(B, target_steps)
    best_any, best_even = 1, None
    for tb in range(1, B + 1):
        if tb * per_image_bytes > budget_bytes:
            break
        if B % tb:
            continue
        steps = B // tb
        if steps >= need_steps:
            best_any = tb
            if steps % 2 == 0:
                best_even = tb
    return best_even if best_even is not None else best_any


def _pick_hw_tile(HW, C, itemsize, budget_bytes):
    """Largest spatial tile that is a multiple of 128 lanes, divides HW and
    keeps a (1, C, THW) block within the budget.  (Does not tile C: for
    C-so-large-that-one-128-lane-strip-overflows, the caller falls back to a
    whole-image block with a raised vmem limit.)"""
    if HW % 128 != 0:
        return None
    best = None
    for k in range(1, HW // 128 + 1):
        thw = 128 * k
        if C * thw * itemsize > budget_bytes:
            break
        if HW % thw == 0:
            best = thw
    return best


# ---------------------------------------------------------------------------
# Public entry point
# ---------------------------------------------------------------------------

def se_block(x, w1, w2, *, force_hw_tile=None):
    """Squeeze-and-Excitation forward pass.

    x:  (B, C, H, W)   — native PyTorch NCHW layout (no transposes needed).
    w1: (C//r, C)      — excitation[0].weight of nn.Linear(C, C//r, bias=False).
    w2: (C, C//r)      — excitation[2].weight of nn.Linear(C//r, C, bias=False).
    """
    B, C, H, W = x.shape
    HW = H * W
    Cr, C_in = w1.shape
    assert C_in == C and w2.shape == (C, Cr)
    itemsize = x.dtype.itemsize

    # Free layout change: collapse the two contiguous spatial dims so the lane
    # axis is HW (dense stores whenever H*W % 128 == 0; still legal otherwise
    # since the block spans the full (C, HW) dims).  Metadata-only — no HBM
    # round-trip, unlike an NCHW<->NHWC transpose.
    x3 = x.reshape(B, C, HW)

    weight_bytes = 2 * C * Cr * w1.dtype.itemsize
    vmem_cap = _vmem_capacity_bytes()
    # 2x input + 2x output double-buffers per block, plus (double-buffered)
    # resident weights, must stay well inside physical VMEM; blocks in the
    # 1-4 MiB sweet spot keep the pipeline deep.
    slack = 1 << 20
    per_block_budget = min(
        4 << 20, max(1 << 20, (vmem_cap // 2 - 2 * weight_bytes - slack) // 4))

    per_image_bytes = C * HW * itemsize
    tb = None if force_hw_tile else _pick_batch_tile(B, per_image_bytes,
                                                     per_block_budget)
    inv_hw = 1.0 / HW
    main_cost = pl.CostEstimate(
        flops=4 * B * C * Cr,
        transcendentals=B * C,
        bytes_accessed=2 * B * C * HW * itemsize + weight_bytes,
    )

    # ---- Main path: whole image(s) per grid step ---------------------------
    if tb is not None:
        block_bytes = tb * per_image_bytes
        vmem_need = 4 * block_bytes + 2 * weight_bytes + slack
        vmem_limit = int(min(vmem_cap * 7 // 8, max(vmem_need, 32 << 20)))

        out3 = pl.pallas_call(
            functools.partial(_se_fused_kernel, inv_hw=inv_hw, tb=tb),
            out_shape=jax.ShapeDtypeStruct((B, C, HW), x.dtype),
            grid_spec=pltpu.PrefetchScalarGridSpec(
                num_scalar_prefetch=0,
                grid=(B // tb,),
                in_specs=[
                    pl.BlockSpec((tb, C, HW), lambda b: (b, 0, 0)),   # x block
                    pl.BlockSpec((Cr, C), lambda b: (0, 0)),          # w1 resident
                    pl.BlockSpec((C, Cr), lambda b: (0, 0)),          # w2 resident
                ],
                out_specs=pl.BlockSpec((tb, C, HW), lambda b: (b, 0, 0)),
            ),
            compiler_params=pltpu.CompilerParams(
                dimension_semantics=("parallel",),   # batch axis -> megacore
                vmem_limit_bytes=vmem_limit,
            ),
            cost_estimate=main_cost,
        )(x3, w1, w2)
        return out3.reshape(B, C, H, W)

    # ---- HW-tiled fallback: B=1 / image larger than the block budget -------
    thw = force_hw_tile if force_hw_tile else _pick_hw_tile(
        HW, C, itemsize, per_block_budget)
    if thw is None or HW % thw != 0:
        thw = HW  # last resort: whole image per step; vmem limit stretches.
    n_hw = HW // thw
    block_bytes = C * thw * itemsize
    vmem_need = 4 * block_bytes + 2 * weight_bytes + slack
    vmem_limit = int(min(vmem_cap * 7 // 8, max(vmem_need, 32 << 20)))

    # Pass 1: squeeze (f32 accumulator over spatial tiles) + gate.
    gate = pl.pallas_call(
        functools.partial(_se_squeeze_gate_kernel, inv_hw=inv_hw),
        out_shape=jax.ShapeDtypeStruct((B, C, 1), jnp.float32),
        grid_spec=pltpu.PrefetchScalarGridSpec(
            num_scalar_prefetch=0,
            grid=(B, n_hw),
            in_specs=[
                pl.BlockSpec((1, C, thw), lambda b, t: (b, 0, t)),
                pl.BlockSpec((Cr, C), lambda b, t: (0, 0)),
                pl.BlockSpec((C, Cr), lambda b, t: (0, 0)),
            ],
            out_specs=pl.BlockSpec((1, C, 1), lambda b, t: (b, 0, 0)),
            scratch_shapes=[pltpu.VMEM((C, 1), jnp.float32)],
        ),
        compiler_params=pltpu.CompilerParams(
            dimension_semantics=("parallel", "arbitrary"),
            vmem_limit_bytes=vmem_limit,
        ),
        cost_estimate=pl.CostEstimate(
            flops=4 * B * C * Cr,
            transcendentals=B * C,
            bytes_accessed=B * C * HW * itemsize + weight_bytes,
        ),
    )(x3, w1, w2)

    # Pass 2: apply the gate tile by tile.
    out3 = pl.pallas_call(
        _se_scale_kernel,
        out_shape=jax.ShapeDtypeStruct((B, C, HW), x.dtype),
        grid_spec=pltpu.PrefetchScalarGridSpec(
            num_scalar_prefetch=0,
            grid=(B, n_hw),
            in_specs=[
                pl.BlockSpec((1, C, thw), lambda b, t: (b, 0, t)),
                pl.BlockSpec((1, C, 1), lambda b, t: (b, 0, 0)),
            ],
            out_specs=pl.BlockSpec((1, C, thw), lambda b, t: (b, 0, t)),
        ),
        compiler_params=pltpu.CompilerParams(
            dimension_semantics=("parallel", "parallel"),
            vmem_limit_bytes=vmem_limit,
        ),
        cost_estimate=pl.CostEstimate(
            flops=B * C * HW,
            transcendentals=0,
            bytes_accessed=2 * B * C * HW * itemsize + B * C * 4,
        ),
    )(x3, gate)
    return out3.reshape(B, C, H, W)


# ---------------------------------------------------------------------------
# Pure-JAX reference (mirrors the PyTorch forward)
# ---------------------------------------------------------------------------

def se_block_reference(x, w1, w2):
    y = jnp.mean(x, axis=(2, 3))                                          # (B, C)
    h = jnp.maximum(jnp.dot(y, w1.T, precision=jax.lax.Precision.HIGHEST), 0.0)
    s = jax.nn.sigmoid(jnp.dot(h, w2.T, precision=jax.lax.Precision.HIGHEST))
    return x * s[:, :, None, None]


if __name__ == "__main__":
    # Small but SE-typical shapes; reduction=16 as in the module default.
    B, C, H, W = 8, 128, 16, 16
    reduction = 16
    Cr = C // reduction

    key = jax.random.PRNGKey(0)
    kx, k1, k2 = jax.random.split(key, 3)

    x = jax.random.normal(kx, (B, C, H, W), dtype=jnp.float32)
    # Native nn.Linear weight layouts: (out_features, in_features), bias-free.
    bound1 = 1.0 / (C ** 0.5)
    bound2 = 1.0 / (Cr ** 0.5)
    w1 = jax.random.uniform(k1, (Cr, C), jnp.float32, -bound1, bound1)
    w2 = jax.random.uniform(k2, (C, Cr), jnp.float32, -bound2, bound2)

    ref = se_block_reference(x, w1, w2)

    out = jax.block_until_ready(se_block(x, w1, w2))
    assert out.shape == (B, C, H, W)
    assert jnp.allclose(out, ref, atol=1e-4, rtol=1e-4), "main path mismatch"

    # Also exercise the HW-tiled fallback (used for B=1 / oversized images).
    out_fb = jax.block_until_ready(se_block(x, w1, w2, force_hw_tile=128))
    assert jnp.allclose(out_fb, ref, atol=1e-4, rtol=1e-4), "fallback mismatch"

    print("KERNEL_OK")
</pallas_src>

<mosaic_0001>
module attributes {stable_mosaic.version = 11 : i64} {
  func.func @_se_fused_kernel(%arg0: i32, %arg1: memref<1x128x256xf32, #tpu.memory_space<vmem>>, %arg2: memref<8x128xf32, #tpu.memory_space<vmem>>, %arg3: memref<128x8xf32, #tpu.memory_space<vmem>>, %arg4: memref<1x128x256xf32, #tpu.memory_space<vmem>>) attributes {dimension_semantics = [#tpu.dimension_semantics<parallel>], iteration_bounds = array<i64: 8>, scalar_prefetch = 0 : i64, scratch_operands = 0 : i64, tpu.core_type = #tpu.core_type<tc>, window_params = [{transform_indices = @transform_0, window_bounds = array<i64: 1, 128, 256>}, {pipeline_mode = #tpu.pipeline_mode<synchronous>, transform_indices = @transform_1, window_bounds = array<i64: 8, 128>}, {pipeline_mode = #tpu.pipeline_mode<synchronous>, transform_indices = @transform_2, window_bounds = array<i64: 128, 8>}, {transform_indices = @transform_3, window_bounds = array<i64: 1, 128, 256>}]} {
    %c0 = arith.constant 0 : index
    %c0_0 = arith.constant 0 : index
    %0 = vector.load %arg2[%c0, %c0_0] : memref<8x128xf32, #tpu.memory_space<vmem>>, vector<8x128xf32>
    %c0_1 = arith.constant 0 : index
    %c0_2 = arith.constant 0 : index
    %1 = vector.load %arg3[%c0_1, %c0_2] : memref<128x8xf32, #tpu.memory_space<vmem>>, vector<128x8xf32>
    %c0_3 = arith.constant 0 : index
    %c0_4 = arith.constant 0 : index
    %c0_5 = arith.constant 0 : index
    %2 = vector.load %arg1[%c0_3, %c0_4, %c0_5] : memref<1x128x256xf32, #tpu.memory_space<vmem>>, vector<1x128x256xf32>
    %3 = vector.shape_cast %2 : vector<1x128x256xf32> to vector<128x256xf32>
    %cst = arith.constant dense<0.000000e+00> : vector<128xf32>
    %4 = vector.multi_reduction <add>, %3, %cst [1] : vector<128x256xf32> to vector<128xf32>
    %5 = vector.shape_cast %4 : vector<128xf32> to vector<128x1xf32>
    %cst_6 = arith.constant 3.906250e-03 : f32
    %6 = vector.broadcast %cst_6 : f32 to vector<128x1xf32>
    %7 = arith.mulf %5, %6 : vector<128x1xf32>
    %cst_7 = arith.constant dense<0.000000e+00> : vector<8x1xf32>
    %8 = tpu.matmul %0, %7, %cst_7 {dimension_numbers = #tpu.dot_dimension_numbers<[1], [0], [0], [1], [0, 0, 1, 1], [], []>} : vector<8x128xf32>, vector<128x1xf32>, vector<8x1xf32> -> vector<8x1xf32>
    %cst_8 = arith.constant 0.000000e+00 : f32
    %9 = vector.broadcast %cst_8 : f32 to vector<8x1xf32>
    %10 = arith.maximumf %8, %9 : vector<8x1xf32>
    %cst_9 = arith.constant dense<0.000000e+00> : vector<128x1xf32>
    %11 = tpu.matmul %1, %10, %cst_9 {dimension_numbers = #tpu.dot_dimension_numbers<[1], [0], [0], [1], [0, 0, 1, 1], [], []>} : vector<128x8xf32>, vector<8x1xf32>, vector<128x1xf32> -> vector<128x1xf32>
    %12 = arith.negf %11 : vector<128x1xf32>
    %13 = math.exp %12 : vector<128x1xf32>
    %cst_10 = arith.constant 1.000000e+00 : f32
    %14 = vector.broadcast %cst_10 : f32 to vector<128x1xf32>
    %15 = arith.addf %14, %13 : vector<128x1xf32>
    %16 = arith.divf %14, %15 : vector<128x1xf32>
    %c0_11 = arith.constant 0 : index
    %c0_12 = arith.constant 0 : index
    %c0_13 = arith.constant 0 : index
    %17 = vector.load %arg1[%c0_11, %c0_12, %c0_13] : memref<1x128x256xf32, #tpu.memory_space<vmem>>, vector<1x128x256xf32>
    %18 = vector.shape_cast %17 : vector<1x128x256xf32> to vector<128x256xf32>
    %19 = vector.broadcast %16 : vector<128x1xf32> to vector<128x256xf32>
    %20 = arith.mulf %18, %19 : vector<128x256xf32>
    %c0_14 = arith.constant 0 : index
    %c0_15 = arith.constant 0 : index
    %c0_16 = arith.constant 0 : index
    %21 = vector.load %arg4[%c0_14, %c0_15, %c0_16] : memref<1x128x256xf32, #tpu.memory_space<vmem>>, vector<1x128x256xf32>
    %22 = vector.shape_cast %21 : vector<1x128x256xf32> to vector<128x256xf32>
    %23 = vector.shape_cast %20 : vector<128x256xf32> to vector<1x128x256xf32>
    tpu.vector_store %arg4[%c0_14, %c0_15, %c0_16], %23 {strides = array<i32>} : memref<1x128x256xf32, #tpu.memory_space<vmem>>, vector<1x128x256xf32>,
    return
  }
  func.func @transform_0(%arg0: i32) -> (i32, i32, i32) {
    %c0_i32 = arith.constant 0 : i32
    %c0_i32_0 = arith.constant 0 : i32
    %c0_i32_1 = arith.constant 0 : i32
    return %arg0, %c0_i32, %c0_i32_0 : i32, i32, i32
  }
  func.func @transform_1(%arg0: i32) -> (i32, i32) {
    %c0_i32 = arith.constant 0 : i32
    %c0_i32_0 = arith.constant 0 : i32
    %c0_i32_1 = arith.constant 0 : i32
    return %c0_i32, %c0_i32_0 : i32, i32
  }
  func.func @transform_2(%arg0: i32) -> (i32, i32) {
    %c0_i32 = arith.constant 0 : i32
    %c0_i32_0 = arith.constant 0 : i32
    %c0_i32_1 = arith.constant 0 : i32
    return %c0_i32, %c0_i32_0 : i32, i32
  }
  func.func @transform_3(%arg0: i32) -> (i32, i32, i32) {
    %c0_i32 = arith.constant 0 : i32
    %c0_i32_0 = arith.constant 0 : i32
    %c0_i32_1 = arith.constant 0 : i32
    return %arg0, %c0_i32, %c0_i32_0 : i32, i32, i32
  }
}

</mosaic_0001>

<bundles_post_ra>
// kernel: tpu_custom_call.1
= control target key start
LH: loop header
LB: loop body
LE: loop exit
PB: predicated region body
PF: predicated region fallthrough
CT: control target
= control target key end

     0   :  { %8 = vsyncpa [#allocation3], 0  ;;  %s1745_s0 = inlined_call_operand.hbm [shape: f32[8,128,256], index: 0, kind: input, shape index: {}]   ;;  %s1746_s1 = inlined_call_operand.vmem [shape: f32[8,128], index: 1, kind: input, shape index: {}]   ;;  %s1747_s2 = inlined_call_operand.vmem [shape: f32[128,8], index: 2, kind: input, shape index: {}]   ;;  %s1748_s3 = inlined_call_operand.hbm [shape: f32[8,128,256], index: 3, kind: output, shape index: {}]  }
   0x1   :  { %10 = vsyncpa [#allocation3 + $0x1], 0 }
   0x2   :  { %11 = vsyncpa [#allocation4], 0 }
   0x3   :  { %13 = vsyncpa [#allocation4 + $0x1], 0  ;;  %s1309_s12 = smov 0   ;;  %s1311_s13 = smov 0  }
   0x4   :  { %s1313_s14 = smov 0   ;;  %s1315_s15 = smov 0  }
   0x5 LB: > { %s1330_s16 = sadd.s32 4294967295, %s1277_s15   ;;  %s894_s17 = sadd.s32 4294967294, %s1277_s15   ;;  %s1277_s15 = sphi %s1315_s15, %s1760_s15   ;;  %s1273_s14 = sphi %s1313_s14, %s1759_s14   ;;  %s1269_s13 = sphi %s1311_s13, %s1758_s13   ;;  %s1265_s12 = sphi %s1309_s12, %s1757_s12  }
   0x6   : > { %s1334_s18 = sadd.s32 1, %s1277_s15   ;;  %s26_s19 = sadd.s32 1, %s1273_s14 }
   0x7   : > { %s23_s20 = ssub.s32 %s1277_s15, %s1334_s18  ;;  %p33_p0 = scmp.ne.s32.totalorder %s1273_s14, %s1269_s13 }
   0x8   : > { %p24_p1 = scmp.eq.s32.totalorder %s23_s20, 0  ;;  %p34_p2 = scmp.eq.s32.totalorder %s1277_s15, 0 }
   0x9   : > { %p39_p3 = scmp.ne.s32.totalorder %s1269_s13, %s1265_s12  ;;  %p40_p4 = scmp.eq.s32.totalorder %s1330_s16, 0 }
   0xa   : > { %s1346_s21 = scalar_select %p24_p1, %s1273_s14, %s26_s19  }
   0xb   : > { %p1348_p5 = por %p34_p2, %p33_p0  ;;  %p1352_p6 = por %p40_p4, %p39_p3 }
   0xc   : > { %p105_p7 = scmp.eq.s32.totalorder %s1330_s16, 7  ;;  %p111_p8 = scmp.eq.s32.totalorder %s894_s17, 7 }
   0xd   : > { %p1073_p9 = scmp.lt.s32.totalorder %s1277_s15, 8  ;;  %s137_s26 = sand.u32 1, %s1273_s14  }
   0xe   : > { %p1358_p10 = por %p105_p7, %p33_p0  ;;  %p1362_p11 = por %p111_p8, %p39_p3 }
   0xf   : > { %s940_s27 = sshll.u32 %s1277_s15, 12  ;;  %s897_s28 = sshll.u32 %s137_s26, 8 }
  0x10   : > { %s1752_s24 = scalar_select %p1358_p10, 1, 0 }
  0x11   : > { %s1753_s25 = scalar_select %p1362_p11, 1, 0 }
  0x12   : > { %s1371_s4 = scalar_lea.hbm %s1745_s0, %s940_s27  ;;  %s141_s5 = scalar_lea.vmem [#allocation2], %s897_s28 }
  0x13   : > { %s148_s6 = sshll.u32 %s141_s5, 4  ;;  %p1375_p12 = pnand %p1073_p9, %p1348_p5  ;;  %s1379_s6 = int_to_ptr.vmem [resolvable:$true] %s148_s6 }
  0x14   : > { %s1381_s8 = scalar_lea.sflag [#allocation3], %s137_s26  ;;  %s1181_s9 = scalar_lea.hbm %s1371_s4, 4096 }
  0x15   : > { %p1182_p13 = scmp.ne.s32.totalorder %s1371_s4, %s1181_s9  ;;  %p1183_p0 = pneg %p1375_p12 }
  0x16   : > { %s1186_s17 = scalar_lea.hbm %s1745_s0, 32768  ;;  %p1187_p3 = scmp.lt.u32.totalorder %s1371_s4, %s1745_s0 }
  0x17   : > { %p1184_p1 = pnand %p1183_p0, %p1182_p13  ;;  %p1188_p4 = scmp.lt.u32.totalorder %s1186_s17, %s1181_s9 }
  0x18   : > { %p1190_p7 = scmp.lt.u32.totalorder %s1181_s9, %s1371_s4 }
  0x19   : > { %p1185_p2 = pneg %p1184_p1  ;;  %p1189_p5 = por %p1188_p4, %p1187_p3 }
  0x1b   : > { %p1191_p8 = por %p1190_p7, %p1189_p5 }
  0x1d   : > { %p1192_p9 = pnand %p1191_p8, %p1185_p2 }
  0x1f   : > { %1195 = shalt.err (!%p1192_p9)
}
  0x20   : > { %s1196_s22 = scalar_lea.vmem %s1379_s6, 4096  ;;  %s1279_s26 = smov [#allocation2]  }
  0x21   : > { %p1197_p13 = scmp.ne.s32.totalorder %s1379_s6, %s1196_s22  ;;  %s1201_s27 = sshll.u32 %s1279_s26, 4  ;;  %s1202_s27 = int_to_ptr.vmem [resolvable:$false] %s1201_s27 }
  0x22   : > { %s1203_s28 = scalar_lea.vmem %s1202_s27, 8192  ;;  %p1204_p10 = scmp.lt.s32.totalorder %s1379_s6, %s1202_s27 }
  0x23   : > { %p1199_p1 = pnand %p1197_p13, %p1183_p0  ;;  %p1205_p3 = scmp.lt.s32.totalorder %s1203_s28, %s1196_s22 }
  0x25   : > { %p1200_p11 = pneg %p1199_p1  ;;  %p1206_p4 = por %p1205_p3, %p1204_p10 }
  0x27   : > { %p1207_p5 = pnand %p1206_p4, %p1200_p11 }
  0x29   : > { %1210 = shalt.err (!%p1207_p5)
}
  0x2a   : > { %s1280_s29 = smov 256   ;;  %s1281_s30 = smov 16  }
  0x2b   : > { %1068 = dma.hbm_to_vmem [thread:$0]  (!%p1375_p12), %s1371_s4, 4096, %s1379_s6, %s1381_s8, %s1280_s29, %s1280_s29, %s1281_s30  }
  0x2c   : > { %p900_p0 = scmp.ge.s32.totalorder %s1277_s15, 1  ;;  %p156_p2 = scmp.lt.s32.totalorder %s1277_s15, 9 }
  0x2e   : > { %p157_p7 = pnand %p900_p0, %p156_p2 }
  0x2f   : > { %s1412_s5 = sand.u32 (!%p157_p7), 1, %s1269_s13  }
  0x30   : > { %160 = sbr.rel (%p157_p7) target bundleno = 880 (0x370), region = 32  ;;  %s901_s9 = sshll.u32 (!%p157_p7), %s1412_s5, 8 }
  0x31   : > { %s163_s10 = scalar_lea.sflag (!%p157_p7), [#allocation3], %s1412_s5  ;;  %s1418_s11 = scalar_lea.vmem (!%p157_p7), [#allocation2], %s901_s9 }
  0x37   : > { %1256 = dma.done.wait (%p1352_p6), %s163_s10, 4096  }
  0x38   : > { %1258 = vsyncadd (%p1352_p6), %s163_s10, 4294963200  ;;  %v1425_v0 = vld [vmem:[%s1418_s11 + $0x20] sm:$0xff]  ;;  %v1428_v1 = vld [vmem:[%s1418_s11 + $0x28] sm:$0xff]  ;;  %v1282_v44 = vmov 0.0|0.0   ;;  %vm1283_vm0 = vmmov 0   ;;  %v1284_v49 = vmov 0.0  }
  0x39   : > { %v1431_v2 = vld [vmem:[%s1418_s11] sm:$0xff]  ;;  %v244_v3 = vadd.f32 %v1428_v1, %v1425_v0  ;;  %v1436_v4 = vld [vmem:[%s1418_s11 + $0x8] sm:$0xff]  ;;  %v1439_v5 = vld [vmem:[%s1418_s11 + $0x30] sm:$0xff]  ;;  %1037 = vmatprep.subr.bf16.mxu0 %v1282_v44  ;;  %1008 = vmatprep.mubr.msk.f32.mxu0 %vm1283_vm0, %v1284_v49  ;;  %vm373_vm1 = vcmask 64512   ;;  %s1633_s6 = scalar_lea.vmem [#allocation5], %s901_s9  ;;  %s941_s9 = sshll.u32 %s1330_s16, 12 }
  0x3a   : > { %v1442_v6 = vld [vmem:[%s1418_s11 + $0x38] sm:$0xff]  ;;  %v238_v7 = vadd.f32 %v1436_v4, %v1431_v2  ;;  %v1447_v8 = vld [vmem:[%s1418_s11 + $0x10] sm:$0xff]  ;;  %v1463_v14 = vld [vmem:[%s1418_s11 + $0x40] sm:$0xff]  ;;  %s821_s7 = sshll.u32 %s1633_s6, 4  ;;  %s1696_s19 = scalar_lea.hbm %s1748_s3, %s941_s9  ;;  %s1698_s7 = int_to_ptr.vmem [resolvable:$true] %s821_s7 }
  0x3b   : > { %v1450_v9 = vld [vmem:[%s1418_s11 + $0x18] sm:$0xff]  ;;  %245 = vadd.xlane.f32.xlu1 %v244_v3  ;;  %v247_v10 = vadd.f32 %v1442_v6, %v1439_v5  ;;  %v1457_v12 = vld [vmem:[%s1418_s11 + $0x50] sm:$0xff]  ;;  %v1466_v15 = vld [vmem:[%s1418_s11 + $0x48] sm:$0xff]  ;;  %s808_s16 = scalar_lea.sflag [#allocation4], %s1412_s5  ;;  %s1211_s20 = scalar_lea.vmem %s1698_s7, 4096 }
  0x3c   : > { %239 = vadd.xlane.f32.xlu0 %v238_v7  ;;  %v241_v11 = vadd.f32 %v1450_v9, %v1447_v8  ;;  %v1460_v13 = vld [vmem:[%s1418_s11 + $0x58] sm:$0xff]  ;;  %v250_v17 = vadd.f32 %v1466_v15, %v1463_v14  ;;  %v1473_v18 = vld [vmem:[%s1418_s11 + $0x70] sm:$0xff]  ;;  %v1479_v20 = vld [vmem:[%s1418_s11 + $0x60] sm:$0xff]  ;;  %p1212_p6 = scmp.ne.s32.totalorder %s1698_s7, %s1211_s20  ;;  %p1755_p10 = scmp.ne.s32.totalorder %s1752_s24, 0 }
  0x3d   : > { %v253_v16 = vadd.f32 %v1460_v13, %v1457_v12  ;;  %v1476_v19 = vld [vmem:[%s1418_s11 + $0x78] sm:$0xff]  ;;  %v1482_v21 = vld [vmem:[%s1418_s11 + $0x68] sm:$0xff]  ;;  %v1489_v24 = vld [vmem:[%s1418_s11 + $0x90] sm:$0xff]  ;;  %s1286_s22 = smov [#allocation5]  }
  0x3e   : > { %v259_v22 = vadd.f32 %v1476_v19, %v1473_v18  ;;  %v256_v23 = vadd.f32 %v1482_v21, %v1479_v20  ;;  %v1492_v25 = vld [vmem:[%s1418_s11 + $0x98] sm:$0xff]  ;;  %v1495_v26 = vld [vmem:[%s1418_s11 + $0x80] sm:$0xff]  ;;  %v1498_v27 = vld [vmem:[%s1418_s11 + $0x88] sm:$0xff]  ;;  %p1213_p11 = pnand %p1212_p6, %p1755_p10  ;;  %s1215_s26 = sshll.u32 %s1286_s22, 4  ;;  %s1216_s26 = int_to_ptr.vmem [resolvable:$false] %s1215_s26 }
  0x3f   : > { %248 = vadd.xlane.f32.xlu1 %v247_v10  ;;  %v265_v28 = vadd.f32 %v1492_v25, %v1489_v24  ;;  %v262_v29 = vadd.f32 %v1498_v27, %v1495_v26  ;;  %v1505_v30 = vld [vmem:[%s1418_s11 + $0xb0] sm:$0xff]  ;;  %v1508_v31 = vld [vmem:[%s1418_s11 + $0xb8] sm:$0xff]  ;;  %v1511_v32 = vld [vmem:[%s1418_s11 + $0xa0] sm:$0xff]  ;;  %s1217_s27 = scalar_lea.vmem %s1216_s26, 8192  ;;  %p1218_p8 = scmp.lt.s32.totalorder %s1698_s7, %s1216_s26 }
  0x40   : > { %242 = vadd.xlane.f32.xlu0 %v241_v11  ;;  %v1514_v33 = vld [vmem:[%s1418_s11 + $0xa8] sm:$0xff]  ;;  %v271_v34 = vadd.f32 %v1508_v31, %v1505_v30  ;;  %v1521_v36 = vld [vmem:[%s1418_s11 + $0xd0] sm:$0xff]  ;;  %v1524_v37 = vld [vmem:[%s1418_s11 + $0xd8] sm:$0xff]  ;;  %p1214_p12 = pneg %p1213_p11  ;;  %p1219_p9 = scmp.lt.s32.totalorder %s1217_s27, %s1211_s20 }
  0x41   : > { %v268_v35 = vadd.f32 %v1514_v33, %v1511_v32  ;;  %v1527_v38 = vld [vmem:[%s1418_s11 + $0xc0] sm:$0xff]  ;;  %v1530_v39 = vld [vmem:[%s1418_s11 + $0xc8] sm:$0xff]  ;;  %v277_v40 = vadd.f32 %v1524_v37, %v1521_v36  ;;  %v1537_v42 = vld [vmem:[%s1418_s11 + $0xf0] sm:$0xff] }
  0x42   : > { %v274_v41 = vadd.f32 %v1530_v39, %v1527_v38  ;;  %v1540_v43 = vld [vmem:[%s1418_s11 + $0xf8] sm:$0xff]  ;;  %v1544_v45 = vld [vmem:[%s1418_s11 + $0xe0] sm:$0xff]  ;;  %v1547_v46 = vld [vmem:[%s1418_s11 + $0xe8] sm:$0xff]  ;;  %p1220_p13 = por %p1219_p9, %p1218_p8 }
  0x43   : > { %254 = vadd.xlane.f32.xlu1 %v253_v16  ;;  %v283_v47 = vadd.f32 %v1540_v43, %v1537_v42  ;;  %v280_v48 = vadd.f32 %v1547_v46, %v1544_v45 }
  0x44   : > { %251 = vadd.xlane.f32.xlu0 %v250_v17  ;;  %p1221_p1 = pnand %p1220_p13, %p1214_p12 }
  0x47   : > { %260 = vadd.xlane.f32.xlu1 %v259_v22 }
  0x48   : > { %257 = vadd.xlane.f32.xlu0 %v256_v23 }
  0x4b   : > { %266 = vadd.xlane.f32.xlu1 %v265_v28 }
  0x4c   : > { %263 = vadd.xlane.f32.xlu0 %v262_v29 }
  0x4f   : > { %272 = vadd.xlane.f32.xlu1 %v271_v34 }
  0x50   : > { %269 = vadd.xlane.f32.xlu0 %v268_v35 }
  0x53   : > { %278 = vadd.xlane.f32.xlu1 %v277_v40 }
  0x54   : > { %275 = vadd.xlane.f32.xlu0 %v274_v41 }
  0x57   : > { %284 = vadd.xlane.f32.xlu1 %v283_v47 }
  0x58   : > { %281 = vadd.xlane.f32.xlu0 %v280_v48 }
  0xc8   : > { %v246_v50 = vpop.xlane.xlu1 %245 }
  0xc9   : > { %v240_v51 = vpop.xlane.xlu0 %239  ;;  %v288_v56 = vmul.f32 0.00390625, %v246_v50 }
  0xca   : > { %v286_v54 = vmul.f32 0.00390625, %v240_v51 }
  0xcc   : > { %v249_v52 = vpop.xlane.xlu1 %248 }
  0xcd   : > { %v243_v53 = vpop.xlane.xlu0 %242  ;;  %v289_v57 = vmul.f32 0.00390625, %v249_v52 }
  0xce   : > { %v287_v55 = vmul.f32 0.00390625, %v243_v53 }
  0xcf   : > { %v1041_v63 = vpack.c.bf16 %v289_v57, %v288_v56 }
  0xd0   : > { %v1038_v58 = vpack.c.bf16 %v287_v55, %v286_v54  ;;  %v255_v59 = vpop.xlane.xlu1 %254 }
  0xd1   : > { %v252_v60 = vpop.xlane.xlu0 %251  ;;  %v291_v61 = vmul.f32 0.00390625, %v255_v59  ;;  %v189_v59 = vld [vmem:[%s1746_s1] sm:$0xff] }
  0xd2   : > { %1039 = vmatpush3.bf16.msra.mxu0 %v1038_v58  ;;  %v290_v62 = vmul.f32 0.00390625, %v252_v60  ;;  %v190_v60 = vld [vmem:[%s1747_s2] sm:$0xff] }
  0xd3   : > { %1040 = vmatprep.subr.bf16.mxu0 %v1282_v44  ;;  %1013 = vmatprep.mubr.msk.f32.mxu1 %vm373_vm1, %v190_v60 }
  0xd4   : > { %v261_v3 = vpop.xlane.xlu1 %260  ;;  %v1044_v10 = vpack.c.bf16 %v291_v61, %v290_v62 }
  0xd5   : > { %v258_v7 = vpop.xlane.xlu0 %257  ;;  %v293_v11 = vmul.f32 0.00390625, %v261_v3  ;;  %v192_v3 = vld [vmem:[%s1747_s2 + $0x10] sm:$0xff] }
  0xd6   : > { %1042 = vmatpush3.bf16.msra.mxu0 %v1041_v63  ;;  %v292_v16 = vmul.f32 0.00390625, %v258_v7  ;;  %v193_v7 = vld [vmem:[%s1747_s2 + $0x18] sm:$0xff] }
  0xd7   : > { %1043 = vmatprep.subr.bf16.mxu0 %v1282_v44 }
  0xd8   : > { %v267_v17 = vpop.xlane.xlu1 %266  ;;  %v1047_v23 = vpack.c.bf16 %v293_v11, %v292_v16  ;;  %v195_v11 = vld [vmem:[%s1747_s2 + $0x28] sm:$0xff]  ;;  %v196_v16 = vld [vmem:[%s1747_s2 + $0x30] sm:$0xff] }
  0xd9   : > { %v264_v22 = vpop.xlane.xlu0 %263  ;;  %v295_v28 = vmul.f32 0.00390625, %v267_v17  ;;  %v197_v17 = vld [vmem:[%s1747_s2 + $0x38] sm:$0xff] }
  0xda   : > { %1045 = vmatpush3.bf16.msra.mxu0 %v1044_v10  ;;  %v294_v29 = vmul.f32 0.00390625, %v264_v22  ;;  %v194_v10 = vld [vmem:[%s1747_s2 + $0x20] sm:$0xff] }
  0xdb   : > { %1046 = vmatprep.subr.bf16.mxu0 %v1282_v44  ;;  %v198_v22 = vld [vmem:[%s1747_s2 + $0x40] sm:$0xff] }
  0xdc   : > { %v273_v34 = vpop.xlane.xlu1 %272  ;;  %v1050_v40 = vpack.c.bf16 %v295_v28, %v294_v29  ;;  %v200_v28 = vld [vmem:[%s1747_s2 + $0x50] sm:$0xff]  ;;  %v201_v29 = vld [vmem:[%s1747_s2 + $0x58] sm:$0xff] }
  0xdd   : > { %v270_v35 = vpop.xlane.xlu0 %269  ;;  %v297_v41 = vmul.f32 0.00390625, %v273_v34  ;;  %v202_v34 = vld [vmem:[%s1747_s2 + $0x60] sm:$0xff] }
  0xde   : > { %1048 = vmatpush3.bf16.msra.mxu0 %v1047_v23  ;;  %v296_v47 = vmul.f32 0.00390625, %v270_v35  ;;  %v199_v23 = vld [vmem:[%s1747_s2 + $0x48] sm:$0xff] }
  0xdf   : > { %1049 = vmatprep.subr.bf16.mxu0 %v1282_v44  ;;  %v203_v35 = vld [vmem:[%s1747_s2 + $0x68] sm:$0xff] }
  0xe0   : > { %v279_v48 = vpop.xlane.xlu1 %278  ;;  %v1053_v50 = vpack.c.bf16 %v297_v41, %v296_v47  ;;  %v205_v41 = vld [vmem:[%s1747_s2 + $0x78] sm:$0xff]  ;;  %v1285_v47 = vmov 0  }
  0xe1   : > { %v276_v49 = vpop.xlane.xlu0 %275  ;;  %v299_v51 = vmul.f32 0.00390625, %v279_v48  ;;  %1115 = vset.pattern.permute.xlu1 %v1285_v47  ;;  %1116 = vset.pattern.permute.xlu0 %v1285_v47 }
  0xe2   : > { %1051 = vmatpush3.bf16.msra.mxu0 %v1050_v40  ;;  %v298_v52 = vmul.f32 0.00390625, %v276_v49  ;;  %v204_v40 = vld [vmem:[%s1747_s2 + $0x70] sm:$0xff] }
  0xe3   : > { %1052 = vmatprep.subr.bf16.mxu0 %v1282_v44 }
  0xe4   : > { %v285_v53 = vpop.xlane.xlu1 %284  ;;  %v1056_v55 = vpack.c.bf16 %v299_v51, %v298_v52 }
  0xe5   : > { %v282_v54 = vpop.xlane.xlu0 %281  ;;  %v301_v56 = vmul.f32 0.00390625, %v285_v53 }
  0xe6   : > { %1054 = vmatpush3.bf16.msra.mxu0 %v1053_v50  ;;  %v300_v57 = vmul.f32 0.00390625, %v282_v54 }
  0xe7   : > { %1055 = vmatprep.subr.bf16.mxu0 %v1282_v44 }
  0xe8   : > { %v1059_v58 = vpack.c.bf16 %v301_v56, %v300_v57 }
  0xea   : > { %1057 = vmatpush3.bf16.msra.mxu0 %v1056_v55 }
  0xeb   : > { %1058 = vmatprep.subr.bf16.mxu0 %v1282_v44  ;;  %v191_v44 = vld [vmem:[%s1747_s2 + $0x8] sm:$0xff] }
  0xee   : > { %1060 = vmatpush3.bf16.msra.mxu0 %v1059_v58 }
  0xf1   : > { %1009 = vmatmul.mubr.f32.vlgmr.msra.gmra.mrb[0].mxu0 %v189_v59 }
 0x1c4   : > { %v368_v61 = vpop.f32.mrb[0].mxu0 }
 0x1c5   : > { %v372_v62 = vmax.f32 %v368_v61, 0.0  ;;  %v1010_v63 = vpop.f32.mrb[1].mxu0 }
 0x1c7   : > { %1011 = vmatprep.subr.mxu1 %v372_v62 }
 0x1c8   : > { %1012 = vmatpush3.msra.mxu1 %v372_v62 }
 0x1c9   : > { %1014 = vmatmul.mubr.msk.f32.vlgmr.msra.gmra.mrb[0].mxu1 %vm373_vm1, %v191_v44 }
 0x1ca   : > { %1016 = vmatprep.mubr.msk.f32.mxu1 %vm373_vm1, %v192_v3 }
 0x1cd   : > { %1017 = vmatmul.mubr.msk.f32.gmra.mrb[2].mxu1 %vm373_vm1, %v193_v7 }
 0x1ce   : > { %1019 = vmatprep.mubr.msk.f32.mxu1 %vm373_vm1, %v194_v10 }
 0x1d1   : > { %1020 = vmatmul.mubr.msk.f32.gmra.mrb[4].mxu1 %vm373_vm1, %v195_v11 }
 0x1d2   : > { %1022 = vmatprep.mubr.msk.f32.mxu1 %vm373_vm1, %v196_v16 }
 0x1d5   : > { %1023 = vmatmul.mubr.msk.f32.gmra.mrb[6].mxu1 %vm373_vm1, %v197_v17 }
 0x1d6   : > { %1025 = vmatprep.mubr.msk.f32.mxu1 %vm373_vm1, %v198_v22 }
 0x1d9   : > { %1026 = vmatmul.mubr.msk.f32.gmra.mrb[8].mxu1 %vm373_vm1, %v199_v23 }
 0x1da   : > { %1028 = vmatprep.mubr.msk.f32.mxu1 %vm373_vm1, %v200_v28 }
 0x1dd   : > { %1029 = vmatmul.mubr.msk.f32.gmra.mrb[10].mxu1 %vm373_vm1, %v201_v29 }
 0x1de   : > { %1031 = vmatprep.mubr.msk.f32.mxu1 %vm373_vm1, %v202_v34 }
 0x1e1   : > { %1032 = vmatmul.mubr.msk.f32.gmra.mrb[12].mxu1 %vm373_vm1, %v203_v35 }
 0x1e2   : > { %1034 = vmatprep.mubr.msk.f32.mxu1 %vm373_vm1, %v204_v40 }
 0x1e5   : > { %1035 = vmatmul.mubr.msk.f32.gmra.mrb[14].mxu1 %vm373_vm1, %v205_v41 }
 0x29c   : > { %v1015_v48 = vpop.f32.mrb[0].mxu1 }
 0x29d   : > { %v920_v49 = vmul.f32 -1.442695, %v1015_v48  ;;  %v488_v50 = vpop.f32.mrb[1].mxu1 }
 0x29e   : > { %v919_v51 = vmul.f32 -1.442695, %v488_v50 }
 0x29f   : > { %1117 = vpow2.f32 %v920_v49 }
 0x2a0   : > { %1119 = vpow2.f32 %v919_v51  ;;  %v1018_v52 = vpop.f32.mrb[2].mxu1 }
 0x2a1   : > { %v922_v53 = vmul.f32 -1.442695, %v1018_v52  ;;  %v498_v54 = vpop.f32.mrb[3].mxu1 }
 0x2a2   : > { %v921_v55 = vmul.f32 -1.442695, %v498_v54 }
 0x2a3   : > { %1121 = vpow2.f32 %v922_v53 }
 0x2a4   : > { %1123 = vpow2.f32 %v921_v55  ;;  %v1021_v56 = vpop.f32.mrb[4].mxu1 }
 0x2a5   : > { %v924_v57 = vmul.f32 -1.442695, %v1021_v56  ;;  %v508_v58 = vpop.f32.mrb[5].mxu1 }
 0x2a6   : > { %v923_v59 = vmul.f32 -1.442695, %v508_v58 }
 0x2a7   : > { %1125 = vpow2.f32 %v924_v57 }
 0x2a8   : > { %v1024_v60 = vpop.f32.mrb[6].mxu1  ;;  %1127 = vpow2.f32 %v923_v59 }
 0x2a9   : > { %v1118_v61 = vpop.eup %1117  ;;  %v926_v62 = vmul.f32 -1.442695, %v1024_v60  ;;  %v518_v63 = vpop.f32.mrb[7].mxu1 }
 0x2aa   : > { %v1120_v44 = vpop.eup %1119  ;;  %v616_v3 = vadd.f32 1.0, %v1118_v61  ;;  %v925_v28 = vmul.f32 -1.442695, %v518_v63 }
 0x2ab   : > { %v615_v7 = vadd.f32 1.0, %v1120_v44  ;;  %1129 = vpow2.f32 %v926_v62 }
 0x2ac   : > { %1131 = vrcp.f32 %v616_v3  ;;  %v1027_v10 = vpop.f32.mrb[8].mxu1 }
 0x2ad   : > { %v1122_v11 = vpop.eup %1121  ;;  %1133 = vrcp.f32 %v615_v7  ;;  %v928_v16 = vmul.f32 -1.442695, %v1027_v10  ;;  %v528_v17 = vpop.f32.mrb[9].mxu1 }
 0x2ae   : > { %v1124_v22 = vpop.eup %1123  ;;  %v618_v23 = vadd.f32 1.0, %v1122_v11  ;;  %v927_v40 = vmul.f32 -1.442695, %v528_v17 }
 0x2af   : > { %1135 = vpow2.f32 %v928_v16  ;;  %v617_v29 = vadd.f32 1.0, %v1124_v22 }
 0x2b0   : > { %1137 = vrcp.f32 %v618_v23  ;;  %v1030_v34 = vpop.f32.mrb[10].mxu1 }
 0x2b1   : > { %v1126_v35 = vpop.eup %1125  ;;  %v930_v41 = vmul.f32 -1.442695, %v1030_v34  ;;  %v538_v47 = vpop.f32.mrb[11].mxu1  ;;  %1139 = vpow2.f32 %v925_v28 }
 0x2b2   : > { %v620_v48 = vadd.f32 1.0, %v1126_v35  ;;  %v1128_v49 = vpop.eup %1127  ;;  %v929_v50 = vmul.f32 -1.442695, %v538_v47 }
 0x2b3   : > { %1141 = vpow2.f32 %v930_v41  ;;  %v619_v56 = vadd.f32 1.0, %v1128_v49 }
 0x2b4   : > { %1143 = vrcp.f32 %v617_v29  ;;  %v1033_v51 = vpop.f32.mrb[12].mxu1 }
 0x2b5   : > { %v1130_v52 = vpop.eup %1129  ;;  %1145 = vpow2.f32 %v927_v40  ;;  %v932_v53 = vmul.f32 -1.442695, %v1033_v51  ;;  %v548_v54 = vpop.f32.mrb[13].mxu1 }
 0x2b6   : > { %v1132_v55 = vpop.eup %1131  ;;  %1147 = vrcp.f32 %v620_v48  ;;  %v931_v58 = vmul.f32 -1.442695, %v548_v54  ;;  %v622_v44 = vadd.f32 1.0, %v1130_v52 }
 0x2b7   : > { %v1134_v57 = vpop.eup %1133  ;;  %1149 = vpow2.f32 %v932_v53  ;;  %670 = vperm.xlu1 %1115, %v1132_v55  }
 0x2b8   : > { %1151 = vpow2.f32 %v929_v50  ;;  %665 = vperm.xlu0 %1116, %v1134_v57   ;;  %v1036_v59 = vpop.f32.mrb[14].mxu1 }
 0x2b9   : > { %v1136_v60 = vpop.eup %1135  ;;  %v934_v61 = vmul.f32 -1.442695, %v1036_v59  ;;  %v558_v62 = vpop.f32.mrb[15].mxu1  ;;  %1153 = vrcp.f32 %v619_v56 }
 0x2ba   : > { %v1138_v63 = vpop.eup %1137  ;;  %v624_v3 = vadd.f32 1.0, %v1136_v60  ;;  %1155 = vpow2.f32 %v931_v58  ;;  %v933_v11 = vmul.f32 -1.442695, %v558_v62 }
 0x2bb   : > { %680 = vperm.xlu1 %1115, %v1138_v63   ;;  %v1140_v7 = vpop.eup %1139 }
 0x2bc   : > { %1157 = vrcp.f32 %v624_v3  ;;  %v621_v23 = vadd.f32 1.0, %v1140_v7 }
 0x2bd   : > { %v1142_v10 = vpop.eup %1141  ;;  %1159 = vpow2.f32 %v934_v61 }
 0x2be   : > { %v1144_v16 = vpop.eup %1143  ;;  %1161 = vrcp.f32 %v622_v44  ;;  %v626_v17 = vadd.f32 1.0, %v1142_v10 }
 0x2bf   : > { %v1146_v22 = vpop.eup %1145  ;;  %675 = vperm.xlu1 %1115, %v1144_v16  }
 0x2c0   : > { %v1148_v28 = vpop.eup %1147  ;;  %1163 = vrcp.f32 %v626_v17  ;;  %v623_v35 = vadd.f32 1.0, %v1146_v22 }
 0x2c1   : > { %v1150_v29 = vpop.eup %1149  ;;  %1165 = vpow2.f32 %v933_v11 }
 0x2c2   : > { %v1152_v34 = vpop.eup %1151  ;;  %v628_v40 = vadd.f32 1.0, %v1150_v29  ;;  %1167 = vrcp.f32 %v621_v23 }
 0x2c3   : > { %690 = vperm.xlu1 %1115, %v1148_v28   ;;  %v1154_v41 = vpop.eup %1153  ;;  %v625_v48 = vadd.f32 1.0, %v1152_v34 }
 0x2c4   : > { %1169 = vrcp.f32 %v628_v40  ;;  %v1156_v47 = vpop.eup %1155 }
 0x2c5   : > { %1171 = vrcp.f32 %v623_v35  ;;  %v627_v54 = vadd.f32 1.0, %v1156_v47 }
 0x2c6   : > { %v1158_v49 = vpop.eup %1157  ;;  %1173 = vrcp.f32 %v625_v48 }
 0x2c7   : > { %v1160_v50 = vpop.eup %1159  ;;  %685 = vperm.xlu1 %1115, %v1154_v41   ;;  %710 = vperm.xlu0 %1116, %v1158_v49  }
 0x2c8   : > { %v1162_v51 = vpop.eup %1161  ;;  %v630_v52 = vadd.f32 1.0, %v1160_v50 }
 0x2ca   : > { %v1164_v53 = vpop.eup %1163  ;;  %1175 = vrcp.f32 %v630_v52 }
 0x2cb   : > { %v1166_v55 = vpop.eup %1165  ;;  %700 = vperm.xlu1 %1115, %v1162_v51   ;;  %720 = vperm.xlu0 %1116, %v1164_v53   ;;  %1177 = vrcp.f32 %v627_v54 }
 0x2cc   : > { %v1168_v56 = vpop.eup %1167  ;;  %v629_v58 = vadd.f32 1.0, %v1166_v55 }
 0x2ce   : > { %v1170_v57 = vpop.eup %1169  ;;  %1179 = vrcp.f32 %v629_v58 }
 0x2cf   : > { %695 = vperm.xlu1 %1115, %v1168_v56   ;;  %730 = vperm.xlu0 %1116, %v1170_v57   ;;  %v1172_v59 = vpop.eup %1171 }
 0x2d0   : > { %v1174_v60 = vpop.eup %1173 }
 0x2d3   : > { %705 = vperm.xlu1 %1115, %v1172_v59  }
 0x2d4   : > { %v1176_v61 = vpop.eup %1175 }
 0x2d5   : > { %740 = vperm.xlu0 %1116, %v1176_v61   ;;  %v1178_v62 = vpop.eup %1177 }
 0x2d7   : > { %715 = vperm.xlu1 %1115, %v1174_v60  }
 0x2d8   : > { %v1180_v63 = vpop.eup %1179 }
 0x2db   : > { %725 = vperm.xlu1 %1115, %v1178_v62  }
 0x2df   : > { %735 = vperm.xlu1 %1115, %v1180_v63  }
 0x336   : > { %v671_v44 = vpop.permute.xlu1 %670 }
 0x337   : > { %v745_v3 = vmul.f32 %v671_v44, %v1447_v8  ;;  %v746_v7 = vmul.f32 %v671_v44, %v1450_v9  ;;  %v666_v10 = vpop.permute.xlu0 %665 }
 0x338   : > { %v743_v11 = vmul.f32 %v666_v10, %v1431_v2  ;;  %v744_v16 = vmul.f32 %v666_v10, %v1436_v4 }
 0x339   : > { %777 = vst [vmem:[%s1633_s6 + $0x10] sm:$0xff] %v745_v3  ;;  %778 = vst [vmem:[%s1633_s6 + $0x18] sm:$0xff] %v746_v7 }
 0x33a   : > { %775 = vst [vmem:[%s1633_s6] sm:$0xff] %v743_v11  ;;  %776 = vst [vmem:[%s1633_s6 + $0x8] sm:$0xff] %v744_v16  ;;  %v681_v2 = vpop.permute.xlu1 %680 }
 0x33b   : > { %v749_v4 = vmul.f32 %v681_v2, %v1439_v5  ;;  %v750_v8 = vmul.f32 %v681_v2, %v1442_v6 }
 0x33d   : > { %781 = vst [vmem:[%s1633_s6 + $0x30] sm:$0xff] %v749_v4  ;;  %782 = vst [vmem:[%s1633_s6 + $0x38] sm:$0xff] %v750_v8 }
 0x33e   : > { %v676_v9 = vpop.permute.xlu1 %675 }
 0x33f   : > { %v747_v17 = vmul.f32 %v676_v9, %v1425_v0  ;;  %v748_v22 = vmul.f32 %v676_v9, %v1428_v1 }
 0x341   : > { %779 = vst [vmem:[%s1633_s6 + $0x20] sm:$0xff] %v747_v17  ;;  %780 = vst [vmem:[%s1633_s6 + $0x28] sm:$0xff] %v748_v22 }
 0x342   : > { %v691_v23 = vpop.permute.xlu1 %690 }
 0x343   : > { %v753_v28 = vmul.f32 %v691_v23, %v1457_v12  ;;  %v754_v5 = vmul.f32 %v691_v23, %v1460_v13 }
 0x345   : > { %785 = vst [vmem:[%s1633_s6 + $0x50] sm:$0xff] %v753_v28  ;;  %786 = vst [vmem:[%s1633_s6 + $0x58] sm:$0xff] %v754_v5 }
 0x346   : > { %v686_v6 = vpop.permute.xlu1 %685  ;;  %v711_v29 = vpop.permute.xlu0 %710 }
 0x347   : > { %v751_v0 = vmul.f32 %v686_v6, %v1463_v14  ;;  %v752_v1 = vmul.f32 %v686_v6, %v1466_v15  ;;  %v761_v34 = vmul.f32 %v711_v29, %v1489_v24  ;;  %v762_v35 = vmul.f32 %v711_v29, %v1492_v25 }
 0x349   : > { %783 = vst [vmem:[%s1633_s6 + $0x40] sm:$0xff] %v751_v0  ;;  %784 = vst [vmem:[%s1633_s6 + $0x48] sm:$0xff] %v752_v1 }
 0x34a   : > { %793 = vst [vmem:[%s1633_s6 + $0x90] sm:$0xff] %v761_v34  ;;  %794 = vst [vmem:[%s1633_s6 + $0x98] sm:$0xff] %v762_v35  ;;  %v701_v12 = vpop.permute.xlu1 %700  ;;  %v721_v13 = vpop.permute.xlu0 %720 }
 0x34b   : > { %v757_v40 = vmul.f32 %v701_v12, %v1473_v18  ;;  %v758_v14 = vmul.f32 %v701_v12, %v1476_v19  ;;  %v765_v15 = vmul.f32 %v721_v13, %v1505_v30  ;;  %v766_v24 = vmul.f32 %v721_v13, %v1508_v31 }
 0x34d   : > { %789 = vst [vmem:[%s1633_s6 + $0x70] sm:$0xff] %v757_v40  ;;  %790 = vst [vmem:[%s1633_s6 + $0x78] sm:$0xff] %v758_v14 }
 0x34e   : > { %797 = vst [vmem:[%s1633_s6 + $0xb0] sm:$0xff] %v765_v15  ;;  %798 = vst [vmem:[%s1633_s6 + $0xb8] sm:$0xff] %v766_v24  ;;  %v696_v25 = vpop.permute.xlu1 %695  ;;  %v731_v41 = vpop.permute.xlu0 %730 }
 0x34f   : > { %v755_v47 = vmul.f32 %v696_v25, %v1479_v20  ;;  %v756_v18 = vmul.f32 %v696_v25, %v1482_v21  ;;  %v769_v19 = vmul.f32 %v731_v41, %v1521_v36  ;;  %v770_v30 = vmul.f32 %v731_v41, %v1524_v37 }
 0x351   : > { %787 = vst [vmem:[%s1633_s6 + $0x60] sm:$0xff] %v755_v47  ;;  %788 = vst [vmem:[%s1633_s6 + $0x68] sm:$0xff] %v756_v18 }
 0x352   : > { %801 = vst [vmem:[%s1633_s6 + $0xd0] sm:$0xff] %v769_v19  ;;  %802 = vst [vmem:[%s1633_s6 + $0xd8] sm:$0xff] %v770_v30  ;;  %v706_v31 = vpop.permute.xlu1 %705 }
 0x353   : > { %v759_v48 = vmul.f32 %v706_v31, %v1495_v26  ;;  %v760_v49 = vmul.f32 %v706_v31, %v1498_v27 }
 0x354   : > { %v741_v20 = vpop.permute.xlu0 %740 }
 0x355   : > { %791 = vst [vmem:[%s1633_s6 + $0x80] sm:$0xff] %v759_v48  ;;  %792 = vst [vmem:[%s1633_s6 + $0x88] sm:$0xff] %v760_v49  ;;  %v773_v21 = vmul.f32 %v741_v20, %v1537_v42  ;;  %v774_v36 = vmul.f32 %v741_v20, %v1540_v43 }
 0x356   : > { %v716_v37 = vpop.permute.xlu1 %715 }
 0x357   : > { %805 = vst [vmem:[%s1633_s6 + $0xf0] sm:$0xff] %v773_v21  ;;  %806 = vst [vmem:[%s1633_s6 + $0xf8] sm:$0xff] %v774_v36  ;;  %v763_v50 = vmul.f32 %v716_v37, %v1511_v32  ;;  %v764_v26 = vmul.f32 %v716_v37, %v1514_v33 }
 0x359   : > { %795 = vst [vmem:[%s1633_s6 + $0xa0] sm:$0xff] %v763_v50  ;;  %796 = vst [vmem:[%s1633_s6 + $0xa8] sm:$0xff] %v764_v26 }
 0x35a   : > { %v726_v27 = vpop.permute.xlu1 %725 }
 0x35b   : > { %v767_v51 = vmul.f32 %v726_v27, %v1527_v38  ;;  %v768_v42 = vmul.f32 %v726_v27, %v1530_v39 }
 0x35d   : > { %799 = vst [vmem:[%s1633_s6 + $0xc0] sm:$0xff] %v767_v51  ;;  %800 = vst [vmem:[%s1633_s6 + $0xc8] sm:$0xff] %v768_v42 }
 0x35e   : > { %v736_v43 = vpop.permute.xlu1 %735 }
 0x35f   : > { %v771_v32 = vmul.f32 %v736_v43, %v1544_v45  ;;  %v772_v33 = vmul.f32 %v736_v43, %v1547_v46 }
 0x361   : > { %803 = vst [vmem:[%s1633_s6 + $0xe0] sm:$0xff] %v771_v32  ;;  %804 = vst [vmem:[%s1633_s6 + $0xe8] sm:$0xff] %v772_v33 }
 0x362   : > { %1224 = shalt.err (!%p1221_p1)
}
 0x363   : > { %s1225_s28 = scalar_lea.hbm %s1696_s19, 4096  ;;  %s1229_s10 = scalar_lea.hbm %s1748_s3, 32768 }
 0x364   : > { %p1226_p3 = scmp.ne.s32.totalorder %s1696_s19, %s1225_s28  ;;  %p1230_p0 = scmp.lt.u32.totalorder %s1696_s19, %s1748_s3 }
 0x365   : > { %p1231_p2 = scmp.lt.u32.totalorder %s1229_s10, %s1225_s28  ;;  %p1233_p6 = scmp.lt.u32.totalorder %s1225_s28, %s1696_s19 }
 0x366   : > { %p1227_p4 = pnand %p1226_p3, %p1755_p10 }
 0x367   : > { %p1232_p7 = por %p1231_p2, %p1230_p0 }
 0x368   : > { %p1228_p5 = pneg %p1227_p4 }
 0x369   : > { %p1234_p11 = por %p1233_p6, %p1232_p7 }
 0x36b   : > { %p1235_p12 = pnand %p1234_p11, %p1228_p5 }
 0x36d   : > { %1238 = shalt.err (!%p1235_p12)
}
 0x36e   : > { %s1287_s4 = smov 256   ;;  %s1288_s6 = smov 16  }
 0x36f   : > { %1063 = dma.vmem_to_hbm [thread:$0]  (%p1755_p10), %s1698_s7, 4096, %s1696_s19, %s808_s16, %s1287_s4, %s1287_s4, %s1288_s6  }
 0x370 PF: > { %p1074_p8 = scmp.ge.s32.totalorder %s1277_s15, 2  ;;  %s836_s9 = sand.u32 1, %s1265_s12  }
 0x371   : > { %p1756_p9 = scmp.ne.s32.totalorder %s1753_s25, 0  ;;  %s837_s8 = scalar_lea.sflag [#allocation4], %s836_s9 }
 0x373   : > { %p1070_p13 = pnand %p1074_p8, %p1756_p9 }
 0x375   : > { %1260 = dma.done.wait (!%p1070_p13), %s837_s8, 4096  }
 0x376   : > { %1262 = vsyncadd (!%p1070_p13), %s837_s8, 4294963200  ;;  %p16_p1 = scmp.ge.s32.totalorder %s1334_s18, 10   ;;  %s1757_s12 = smov %s1269_s13 }
 0x377   : > { %s1758_s13 = smov %s1273_s14  ;;  %s1759_s14 = smov %s1346_s21 }
 0x378   : > { %s1760_s15 = smov %s1334_s18  ;;  %18 = sbr.rel (!%p16_p1) target bundleno = 5 (0x5), region = 77 }
 0x37f   :  { %842 = vsyncpa [#allocation3], 1 }
 0x380   :  { %844 = vsyncpa [#allocation3 + $0x1], 1 }
 0x381   :  { %845 = vsyncpa [#allocation4], 1 }
 0x382   :  { %847 = vsyncpa [#allocation4 + $0x1], 1 }

</bundles_post_ra>
